<compile_context>
chip_gen: v7x
topology: tpu7x:2x2x1
jax: 0.10.0
libtpu: 0.0.40
codegen_flags: <defaults>
</compile_context>

<pallas_src>
import functools

import jax
import jax.numpy as jnp
import numpy as np
from jax.experimental import pallas as pl
from jax.experimental.pallas import tpu as pltpu

LANE = 128     # TPU lane width; head outputs are padded to this for dense stores
SUBLANE = 8


def _round_up(n, m):
    return ((n + m - 1) // m) * m


def _cdiv(a, b):
    return -(-a // b)


def _full_spec(shape):
    nd = len(shape)
    return pl.BlockSpec(tuple(shape), lambda *_, nd=nd: (0,) * nd)


# ----------------------------- Pallas kernels ------------------------------

def _tiled_proj_kernel(tok_ref, node_ref, wt_ref, bt_ref, wdec_ref,
                       tokp_ref, dec_ref, *, compute_dtype):
    """Row-tiled text_proj and encoder_to_decoder.

    Weights are pre-transposed to [in, out_padded_to_128] on the host (no
    in-kernel transpose / XLU vxpose) and kept resident across the row grid;
    each output store is a lane-dense 128-wide slab.  `compute_dtype` lets the
    dot inputs be cast to bf16 at production while accumulating in f32.
    """
    cd = compute_dtype
    f32 = jnp.float32
    tokp_ref[...] = (
        jnp.dot(tok_ref[...].astype(cd), wt_ref[...].astype(cd),
                preferred_element_type=f32)
        + bt_ref[...])
    dec_ref[...] = jnp.dot(node_ref[...].astype(cd), wdec_ref[...].astype(cd),
                           preferred_element_type=f32)


def _small_heads_kernel(x_ref, wbd_ref, bbd_ref, wgsm_ref, bgsm_ref,
                        fusion_ref, graph_ref, gsm_ref, *, batch, dpad):
    """One-shot tiny heads: block-diagonal (sumamry_proj | graph_proj) dot,
    EUP-rsqrt L2 normalize (torch eps=1e-12 -> clamp sumsq at 1e-24), and a
    single fused gsm dot with one full-slab store."""
    f32 = jnp.float32

    # One dot for both projections: x = [cls_hidden | graph_rep],
    # wbd = blockdiag(sumamry_proj.T, graph_proj.T) padded to 2*dpad lanes.
    y = jnp.dot(x_ref[...], wbd_ref[...], preferred_element_type=f32) + bbd_ref[...]
    y_sum = y[:, :dpad]          # lane slice at a 128-lane tile boundary
    y_g = y[:, dpad:]

    inv_s = jax.lax.rsqrt(
        jnp.maximum(jnp.sum(y_sum * y_sum, axis=-1, keepdims=True), 1e-24))
    inv_g = jax.lax.rsqrt(
        jnp.maximum(jnp.sum(y_g * y_g, axis=-1, keepdims=True), 1e-24))
    fusion = y_sum * inv_s
    graph = y_g * inv_g
    fusion_ref[...] = fusion
    graph_ref[...] = graph

    # gsm_head on torch.cat([fusion, graph, graph], dim=0):
    # one [2B, dpad] @ [dpad, gpad] dot, then ONE full-slab store.
    # Padded lanes (>= embed_dim) of fusion/graph are exactly zero and the
    # matching rows of wgsm are zero-padded, so the contraction is unchanged.
    vl = jnp.concatenate([fusion, graph], axis=0)
    gsm_vl = jnp.dot(vl, wgsm_ref[...], preferred_element_type=f32) + bgsm_ref[...]
    gsm_ref[...] = jnp.concatenate([gsm_vl, gsm_vl[batch:]], axis=0)


def _mixup_pad_kernel(t_ref, g_ref, o_ref, *, alpha, n_text, n_graph):
    """mixup_embeds: alpha*text + (1-alpha)*graph.  The F.pad of the shorter
    sequence is built in-vreg (zero concat along the sublane axis) so the
    result is written with a SINGLE full-block, lane-dense store."""
    a = float(alpha)
    s = max(n_text, n_graph)
    t = t_ref[...]
    g = g_ref[...]
    if n_text < s:
        t = jnp.concatenate(
            [t, jnp.zeros(t.shape[:1] + (s - n_text,) + t.shape[2:], t.dtype)], axis=1)
    if n_graph < s:
        g = jnp.concatenate(
            [g, jnp.zeros(g.shape[:1] + (s - n_graph,) + g.shape[2:], g.dtype)], axis=1)
    o_ref[...] = a * t + (1.0 - a) * g


# ------------------------------ thin wrappers -------------------------------

def pallas_mixup_pad(text_embeds, graph_embeds, alpha):
    B, T, D = text_embeds.shape
    _, N, _ = graph_embeds.shape
    S = max(T, N)
    return pl.pallas_call(
        functools.partial(_mixup_pad_kernel, alpha=float(alpha), n_text=T, n_graph=N),
        out_shape=jax.ShapeDtypeStruct((B, S, D), jnp.float32),
        grid=(B,),   # batch-parallel grid: gives v7x's 2 TensorCores work
        in_specs=[pl.BlockSpec((1, T, D), lambda b: (b, 0, 0)),
                  pl.BlockSpec((1, N, D), lambda b: (b, 0, 0))],
        out_specs=pl.BlockSpec((1, S, D), lambda b: (b, 0, 0)),
        compiler_params=pltpu.CompilerParams(dimension_semantics=("parallel",)),
    )(text_embeds, graph_embeds)


# ------------------------------- RTL_Fusion ---------------------------------

class RTLFusionPallas:
    """Pallas port of the RTL_Fusion projection heads / mixup path."""

    def __init__(self, key, *, embed_dim, text_width, bert_hidden):
        self.embed_dim = embed_dim
        self.text_width = text_width
        self.bert_hidden = bert_hidden
        self._dpad = _round_up(embed_dim, LANE)   # lane-dense padded head width
        self._gpad = _round_up(2, LANE)

        ks = jax.random.split(key, 9)

        def lin(kw, kb, out_f, in_f):
            w = jax.random.normal(kw, (out_f, in_f), jnp.float32) * 0.02
            b = jax.random.normal(kb, (out_f,), jnp.float32) * 0.02
            return w, b

        # PyTorch-layout parameters ([out, in]); kept for the pure-JAX reference.
        self.sumamry_proj_w, self.sumamry_proj_b = lin(ks[0], ks[1], embed_dim, bert_hidden)
        self.graph_proj_w, self.graph_proj_b = lin(ks[2], ks[3], embed_dim, embed_dim)
        self.text_proj_w, self.text_proj_b = lin(ks[4], ks[5], embed_dim, text_width)
        self.enc2dec_w = jax.random.normal(ks[6], (embed_dim, embed_dim), jnp.float32) * 0.02
        self.gsm_head_w, self.gsm_head_b = lin(ks[7], ks[8], 2, embed_dim)
        # TODO(synk): BertForMaskedLM, BertTokenizer, Graphormer, MLP_dec
        # (gtmae_decoder), TripletLoss and net_enc are external sub-modules with
        # no in-file definition; they are not reproduced here.

        # Kernel-layout parameters: transposed once on the host to [in, out] and
        # zero-padded along the output dim (and gsm's contraction dim) to 128.
        E, dpad, gpad = embed_dim, self._dpad, self._gpad
        f32 = jnp.float32

        # text_proj / encoder_to_decoder (tiled kernel, resident weights).
        self.k_wt = jnp.zeros((text_width, dpad), f32).at[:, :E].set(self.text_proj_w.T)
        self.k_bt = jnp.zeros((1, dpad), f32).at[0, :E].set(self.text_proj_b)
        self.k_wdec = jnp.zeros((E, dpad), f32).at[:, :E].set(self.enc2dec_w.T)

        # Block-diagonal fused (sumamry_proj | graph_proj) weight/bias.
        Kc = bert_hidden + E
        wbd = jnp.zeros((Kc, 2 * dpad), f32)
        wbd = wbd.at[:bert_hidden, :E].set(self.sumamry_proj_w.T)
        wbd = wbd.at[bert_hidden:, dpad:dpad + E].set(self.graph_proj_w.T)
        self.k_wbd = wbd
        self.k_bbd = (jnp.zeros((1, 2 * dpad), f32)
                      .at[0, :E].set(self.sumamry_proj_b)
                      .at[0, dpad:dpad + E].set(self.graph_proj_b))

        # gsm consumes the dpad-wide (zero-padded) fusion/graph rows built in
        # the kernel, so its contraction dim is padded to the same width.
        self.k_wgsm = jnp.zeros((dpad, gpad), f32).at[:E, :2].set(self.gsm_head_w.T)
        self.k_bgsm = jnp.zeros((1, gpad), f32).at[0, :2].set(self.gsm_head_b)

    # --- the module's Linear heads: one tiled call + one tiny one-shot call ---
    def fused_heads(self, node_embeds, token_embeds_raw, cls_hidden, graph_rep,
                    *, tm=512, compute_dtype=jnp.float32):
        """text_proj, encoder_to_decoder (M-tiled, megacore-parallel) and
        F.normalize(sumamry_proj(cls)), F.normalize(graph_proj(graph_rep)),
        gsm_head(cat([fusion, graph, graph])) (one-shot tiny-heads kernel).

        `tm` is the target row-tile size (512-2048 at production); at
        production `compute_dtype=jnp.bfloat16` halves the dot-input bytes
        (the L2-normalize / gsm chain stays f32 regardless)."""
        f32 = jnp.float32
        B, T, Kt = token_embeds_raw.shape
        _, N, D = node_embeds.shape
        dpad, gpad = self._dpad, self._gpad

        # ------ call 1: M-tiled, parallel big heads --------------------------
        rows_tok, rows_node = B * T, B * N
        G = max(1, _cdiv(max(rows_tok, rows_node), tm))

        def _tile(rows):
            if G == 1:
                return rows, rows            # full-array block, no padding
            tile = _round_up(_cdiv(rows, G), SUBLANE)
            return tile, tile * G

        tm_tok, rows_tok_p = _tile(rows_tok)
        tm_node, rows_node_p = _tile(rows_node)

        tok_flat = token_embeds_raw.reshape(rows_tok, Kt)
        node_flat = node_embeds.reshape(rows_node, D)
        if rows_tok_p > rows_tok:
            tok_flat = jnp.pad(tok_flat, ((0, rows_tok_p - rows_tok), (0, 0)))
        if rows_node_p > rows_node:
            node_flat = jnp.pad(node_flat, ((0, rows_node_p - rows_node), (0, 0)))

        # VMEM budget: double-buffered row tiles + resident weights + headroom.
        # v7x has only 64 MiB physical VMEM -> cap the scoped limit at 48 MiB
        # (pick `tm` so the computed bytes fit under it).
        itemsize = 4
        step_bytes = itemsize * (tm_tok * (Kt + dpad) + tm_node * (D + dpad))
        weight_bytes = itemsize * (Kt * dpad + dpad + D * dpad)
        vmem_limit = int(min(max(4 * step_bytes + 2 * weight_bytes + (4 << 20),
                                 32 << 20), 48 << 20))

        tokp_p, dec_p = pl.pallas_call(
            functools.partial(_tiled_proj_kernel, compute_dtype=compute_dtype),
            out_shape=(jax.ShapeDtypeStruct((rows_tok_p, dpad), f32),
                       jax.ShapeDtypeStruct((rows_node_p, dpad), f32)),
            grid=(G,),
            in_specs=[pl.BlockSpec((tm_tok, Kt), lambda i: (i, 0)),
                      pl.BlockSpec((tm_node, D), lambda i: (i, 0)),
                      pl.BlockSpec((Kt, dpad), lambda i: (0, 0)),   # resident
                      pl.BlockSpec((1, dpad), lambda i: (0, 0)),    # resident
                      pl.BlockSpec((D, dpad), lambda i: (0, 0))],   # resident
            out_specs=(pl.BlockSpec((tm_tok, dpad), lambda i: (i, 0)),
                       pl.BlockSpec((tm_node, dpad), lambda i: (i, 0))),
            compiler_params=pltpu.CompilerParams(
                dimension_semantics=("parallel",),
                vmem_limit_bytes=vmem_limit),
        )(tok_flat, node_flat, self.k_wt, self.k_bt, self.k_wdec)

        tokp = tokp_p if rows_tok_p == rows_tok else tokp_p[:rows_tok]
        dec = dec_p if rows_node_p == rows_node else dec_p[:rows_node]

        # ------ call 2: one-shot tiny heads (not repeated per row tile) ------
        x_sg = jnp.concatenate([cls_hidden, graph_rep], axis=-1)   # [B, bert_hidden+E]
        fusion, graph, gsm = pl.pallas_call(
            functools.partial(_small_heads_kernel, batch=B, dpad=dpad),
            out_shape=(jax.ShapeDtypeStruct((B, dpad), f32),
                       jax.ShapeDtypeStruct((B, dpad), f32),
                       jax.ShapeDtypeStruct((3 * B, gpad), f32)),
            grid=(1,),
            in_specs=[_full_spec(x_sg.shape), _full_spec(self.k_wbd.shape),
                      _full_spec(self.k_bbd.shape), _full_spec(self.k_wgsm.shape),
                      _full_spec(self.k_bgsm.shape)],
            out_specs=(_full_spec((B, dpad)), _full_spec((B, dpad)),
                       _full_spec((3 * B, gpad))),
            compiler_params=pltpu.CompilerParams(
                dimension_semantics=("arbitrary",)),
        )(x_sg, self.k_wbd, self.k_bbd, self.k_wgsm, self.k_bgsm)

        E = self.embed_dim
        return {
            # Padded slabs are returned directly (lanes >= embed_dim are zero);
            # with embed_dim a lane multiple (the production setting, used in
            # the driver) dpad == embed_dim and these are exact -- no eager
            # un-pad round-trip of the two biggest outputs.
            "token_embeds": tokp.reshape(B, T, dpad),
            "dec_in": dec.reshape(B, N, dpad),
            "fusion_embeds": fusion if E == dpad else fusion[:, :E],
            "graph_embeds": graph if E == dpad else graph[:, :E],
            "gsm_logits": gsm[:, :2],
        }

    # --- mixup_embeds(alpha, graph_embeds, text_embeds): pad shorter seq, blend
    def mixup_embeds(self, alpha, graph_embeds, text_embeds):
        gn, tn = graph_embeds.shape[1], text_embeds.shape[1]
        if alpha == 0 or alpha == 1:
            # torch pads first, then returns one side untouched -- no kernel
            # launch needed (a dedicated call here is pure overhead).
            if gn < tn:
                graph_embeds = jnp.pad(graph_embeds, ((0, 0), (0, tn - gn), (0, 0)))
            elif tn < gn:
                text_embeds = jnp.pad(text_embeds, ((0, 0), (0, gn - tn), (0, 0)))
            mix = graph_embeds if alpha == 0 else text_embeds
        else:
            # blend with the pad folded into the kernel (no HBM pad round-trip)
            mix = pallas_mixup_pad(text_embeds, graph_embeds, alpha)
        attn = jnp.ones(mix.shape[:-1], dtype=jnp.int32)
        return mix, attn

    # --- finetune_forward ('infer' mode) data path ---------------------------
    def finetune_forward(self, heads, node_embeds):
        """'infer' mode: alpha is hard-coded to 0 in the torch module, so
        mixup_embeds == node_embeds (no padding) and token_embeds is unused."""
        mixup_attn_mask = jnp.ones(node_embeds.shape[:-1], dtype=jnp.int32)
        # TODO(synk): self.summary_enc.bert(..., encoder_hidden_states=mixup_embeds,
        # mode='multi_modal') is an external BERT; heads['fusion_embeds'] stands
        # in for F.normalize(sumamry_proj(fusion_output.last_hidden_state[:,0,:])).
        return heads["fusion_embeds"], mixup_attn_mask


# --------------------------------- driver -----------------------------------

if __name__ == "__main__":
    B, T, N = 2, 8, 6            # batch, text seq len, graph node count
    EMBED_DIM = 128              # config['embed_dim']; lane multiple -> dpad == E
    TEXT_WIDTH = 48              # config['text_width']
    BERT_HIDDEN = 64             # summary_enc.config.hidden_size

    key = jax.random.PRNGKey(0)
    k_model, k_node, k_tok, k_cls, k_grep = jax.random.split(key, 5)

    model = RTLFusionPallas(k_model, embed_dim=EMBED_DIM,
                            text_width=TEXT_WIDTH, bert_hidden=BERT_HIDDEN)

    node_embeds = jax.random.normal(k_node, (B, N, EMBED_DIM), jnp.float32)
    token_embeds_raw = jax.random.normal(k_tok, (B, T, TEXT_WIDTH), jnp.float32)
    cls_hidden = jax.random.normal(k_cls, (B, BERT_HIDDEN), jnp.float32)
    graph_rep = jax.random.normal(k_grep, (B, EMBED_DIM), jnp.float32)

    # tm=8 forces a multi-tile 'parallel' row grid even at these toy shapes so
    # the production (tiled, megacore) path is the one actually exercised;
    # production would use the default tm=512 (v6e: 1024-2048).
    heads = model.fused_heads(node_embeds, token_embeds_raw, cls_hidden, graph_rep,
                              tm=8)
    fusion_embeds = heads["fusion_embeds"]   # summary_encode tail
    graph_embeds = heads["graph_embeds"]     # graph_encode tail
    token_embeds = heads["token_embeds"]     # text_proj
    dec_in = heads["dec_in"]                 # mask_attr_prediction enc->dec
    gsm_logits = heads["gsm_logits"]         # gsm / match head

    # pretrain_task_match mixup (alpha = 0.5): pad + blend fused in one kernel.
    mixup_05, _ = model.mixup_embeds(0.5, node_embeds, token_embeds)

    # 'infer' path (alpha == 0 branch).
    fusion_ft, mix_mask = model.finetune_forward(heads, node_embeds)

    outs = jax.block_until_ready(
        (fusion_embeds, graph_embeds, token_embeds, dec_in, gsm_logits,
         mixup_05, fusion_ft, mix_mask))

    # ---- correctness checks against a pure-JAX reference --------------------
    def l2norm(x):
        return x / jnp.maximum(jnp.linalg.norm(x, axis=-1, keepdims=True), 1e-12)

    ref_fusion = l2norm(cls_hidden @ model.sumamry_proj_w.T + model.sumamry_proj_b)
    ref_graph = l2norm(graph_rep @ model.graph_proj_w.T + model.graph_proj_b)
    ref_tok = token_embeds_raw @ model.text_proj_w.T + model.text_proj_b
    ref_dec = node_embeds @ model.enc2dec_w.T
    ref_vl = jnp.concatenate([ref_fusion, ref_graph, ref_graph], axis=0)
    ref_gsm = ref_vl @ model.gsm_head_w.T + model.gsm_head_b
    ref_mix = 0.5 * ref_tok + 0.5 * jnp.pad(node_embeds, ((0, 0), (0, T - N), (0, 0)))

    tol = dict(rtol=2e-4, atol=2e-4)
    np.testing.assert_allclose(np.asarray(fusion_embeds), np.asarray(ref_fusion), **tol)
    np.testing.assert_allclose(np.asarray(graph_embeds), np.asarray(ref_graph), **tol)
    np.testing.assert_allclose(np.asarray(token_embeds), np.asarray(ref_tok), **tol)
    np.testing.assert_allclose(np.asarray(dec_in), np.asarray(ref_dec), **tol)
    np.testing.assert_allclose(np.asarray(gsm_logits), np.asarray(ref_gsm), **tol)
    np.testing.assert_allclose(np.asarray(mixup_05), np.asarray(ref_mix), **tol)
    np.testing.assert_allclose(np.asarray(fusion_ft), np.asarray(ref_fusion), **tol)

    print("KERNEL_OK")
</pallas_src>

<mosaic_0001>
module attributes {stable_mosaic.version = 11 : i64} {
  func.func @_tiled_proj_kernel(%arg0: i32, %arg1: memref<8x48xf32, #tpu.memory_space<vmem>>, %arg2: memref<8x128xf32, #tpu.memory_space<vmem>>, %arg3: memref<48x128xf32, #tpu.memory_space<vmem>>, %arg4: memref<1x128xf32, #tpu.memory_space<vmem>>, %arg5: memref<128x128xf32, #tpu.memory_space<vmem>>, %arg6: memref<8x128xf32, #tpu.memory_space<vmem>>, %arg7: memref<8x128xf32, #tpu.memory_space<vmem>>) attributes {dimension_semantics = [#tpu.dimension_semantics<parallel>], iteration_bounds = array<i64: 2>, scalar_prefetch = 0 : i64, scratch_operands = 0 : i64, tpu.core_type = #tpu.core_type<tc>, window_params = [{transform_indices = @transform_0, window_bounds = array<i64: 8, 48>}, {transform_indices = @transform_1, window_bounds = array<i64: 8, 128>}, {pipeline_mode = #tpu.pipeline_mode<synchronous>, transform_indices = @transform_2, window_bounds = array<i64: 48, 128>}, {pipeline_mode = #tpu.pipeline_mode<synchronous>, transform_indices = @transform_3, window_bounds = array<i64: 1, 128>}, {pipeline_mode = #tpu.pipeline_mode<synchronous>, transform_indices = @transform_4, window_bounds = array<i64: 128, 128>}, {transform_indices = @transform_5, window_bounds = array<i64: 8, 128>}, {transform_indices = @transform_6, window_bounds = array<i64: 8, 128>}]} {
    %c0 = arith.constant 0 : index
    %c0_0 = arith.constant 0 : index
    %0 = vector.load %arg1[%c0, %c0_0] : memref<8x48xf32, #tpu.memory_space<vmem>>, vector<8x48xf32>
    %c0_1 = arith.constant 0 : index
    %c0_2 = arith.constant 0 : index
    %1 = vector.load %arg3[%c0_1, %c0_2] : memref<48x128xf32, #tpu.memory_space<vmem>>, vector<48x128xf32>
    %cst = arith.constant dense<0.000000e+00> : vector<8x128xf32>
    %2 = tpu.matmul %0, %1, %cst {dimension_numbers = #tpu.dot_dimension_numbers<[1], [0], [0], [1], [0, 0, 1, 1], [], []>} : vector<8x48xf32>, vector<48x128xf32>, vector<8x128xf32> -> vector<8x128xf32>
    %c0_3 = arith.constant 0 : index
    %c0_4 = arith.constant 0 : index
    %3 = vector.load %arg4[%c0_3, %c0_4] : memref<1x128xf32, #tpu.memory_space<vmem>>, vector<1x128xf32>
    %4 = vector.broadcast %3 : vector<1x128xf32> to vector<8x128xf32>
    %5 = arith.addf %2, %4 : vector<8x128xf32>
    %c0_5 = arith.constant 0 : index
    %c0_6 = arith.constant 0 : index
    %6 = vector.load %arg6[%c0_5, %c0_6] : memref<8x128xf32, #tpu.memory_space<vmem>>, vector<8x128xf32>
    tpu.vector_store %arg6[%c0_5, %c0_6], %5 {strides = array<i32>} : memref<8x128xf32, #tpu.memory_space<vmem>>, vector<8x128xf32>,
    %c0_7 = arith.constant 0 : index
    %c0_8 = arith.constant 0 : index
    %7 = vector.load %arg2[%c0_7, %c0_8] : memref<8x128xf32, #tpu.memory_space<vmem>>, vector<8x128xf32>
    %c0_9 = arith.constant 0 : index
    %c0_10 = arith.constant 0 : index
    %8 = vector.load %arg5[%c0_9, %c0_10] : memref<128x128xf32, #tpu.memory_space<vmem>>, vector<128x128xf32>
    %cst_11 = arith.constant dense<0.000000e+00> : vector<8x128xf32>
    %9 = tpu.matmul %7, %8, %cst_11 {dimension_numbers = #tpu.dot_dimension_numbers<[1], [0], [0], [1], [0, 0, 1, 1], [], []>} : vector<8x128xf32>, vector<128x128xf32>, vector<8x128xf32> -> vector<8x128xf32>
    %c0_12 = arith.constant 0 : index
    %c0_13 = arith.constant 0 : index
    %10 = vector.load %arg7[%c0_12, %c0_13] : memref<8x128xf32, #tpu.memory_space<vmem>>, vector<8x128xf32>
    tpu.vector_store %arg7[%c0_12, %c0_13], %9 {strides = array<i32>} : memref<8x128xf32, #tpu.memory_space<vmem>>, vector<8x128xf32>,
    return
  }
  func.func @transform_0(%arg0: i32) -> (i32, i32) {
    %c0_i32 = arith.constant 0 : i32
    %c0_i32_0 = arith.constant 0 : i32
    return %arg0, %c0_i32 : i32, i32
  }
  func.func @transform_1(%arg0: i32) -> (i32, i32) {
    %c0_i32 = arith.constant 0 : i32
    %c0_i32_0 = arith.constant 0 : i32
    return %arg0, %c0_i32 : i32, i32
  }
  func.func @transform_2(%arg0: i32) -> (i32, i32) {
    %c0_i32 = arith.constant 0 : i32
    %c0_i32_0 = arith.constant 0 : i32
    %c0_i32_1 = arith.constant 0 : i32
    return %c0_i32, %c0_i32_0 : i32, i32
  }
  func.func @transform_3(%arg0: i32) -> (i32, i32) {
    %c0_i32 = arith.constant 0 : i32
    %c0_i32_0 = arith.constant 0 : i32
    %c0_i32_1 = arith.constant 0 : i32
    return %c0_i32, %c0_i32_0 : i32, i32
  }
  func.func @transform_4(%arg0: i32) -> (i32, i32) {
    %c0_i32 = arith.constant 0 : i32
    %c0_i32_0 = arith.constant 0 : i32
    %c0_i32_1 = arith.constant 0 : i32
    return %c0_i32, %c0_i32_0 : i32, i32
  }
  func.func @transform_5(%arg0: i32) -> (i32, i32) {
    %c0_i32 = arith.constant 0 : i32
    %c0_i32_0 = arith.constant 0 : i32
    return %arg0, %c0_i32 : i32, i32
  }
  func.func @transform_6(%arg0: i32) -> (i32, i32) {
    %c0_i32 = arith.constant 0 : i32
    %c0_i32_0 = arith.constant 0 : i32
    return %arg0, %c0_i32 : i32, i32
  }
}

</mosaic_0001>

<bundles_post_ra>
// kernel: tpu_custom_call.1
= control target key start
LH: loop header
LB: loop body
LE: loop exit
PB: predicated region body
PF: predicated region fallthrough
CT: control target
= control target key end

     0   :  { %s1499_s0 = inlined_call_operand.hbm [shape: f32[16,48], index: 0, kind: input, shape index: {}]   ;;  %s1500_s1 = inlined_call_operand.hbm [shape: f32[16,128], index: 1, kind: input, shape index: {}]   ;;  %s1501_s2 = inlined_call_operand.hbm [shape: f32[48,128], index: 2, kind: input, shape index: {}]   ;;  %s1502_s3 = inlined_call_operand.vmem [shape: f32[1,128], index: 3, kind: input, shape index: {}]   ;;  %s1503_s4 = inlined_call_operand.hbm [shape: f32[128,128], index: 4, kind: input, shape index: {}]   ;;  %s1504_s5 = inlined_call_operand.hbm [shape: f32[16,128], index: 5, kind: output, shape index: {0}]   ;;  %s1505_s6 = inlined_call_operand.hbm [shape: f32[16,128], index: 6, kind: output, shape index: {1}]  }
   0x1   :  { %1510 = sst [smem:[#allocation20_spill]] %s1501_s2 }
   0x2   :  { %1511 = sst [smem:[#allocation21_spill]] %s1503_s4 }
   0x3   :  { %12 = vsyncpa [#allocation3], 0 }
   0x4   :  { %14 = vsyncpa [#allocation3 + $0x1], 0 }
   0x5   :  { %15 = vsyncpa [#allocation6], 0 }
   0x6   :  { %17 = vsyncpa [#allocation6 + $0x1], 0 }
   0x7   :  { %18 = vsyncpa [#allocation9], 0 }
   0x8   :  { %19 = vsyncpa [#allocation4], 0 }
   0x9   :  { %21 = vsyncpa [#allocation4 + $0x1], 0 }
   0xa   :  { %22 = vsyncpa [#allocation12], 0 }
   0xb   :  { %24 = vsyncpa [#allocation12 + $0x1], 0  ;;  %s1184_s21 = smov 0   ;;  %s1186_s22 = smov 0  }
   0xc   :  { %s1188_s23 = smov 0   ;;  %s1190_s24 = smov 0  }
   0xd LB: > { %s1205_s25 = sadd.s32 4294967295, %s1136_s24   ;;  %s697_s26 = sadd.s32 4294967294, %s1136_s24   ;;  %s1136_s24 = sphi %s1190_s24, %s1535_s24   ;;  %s1132_s23 = sphi %s1188_s23, %s1534_s23   ;;  %s1128_s22 = sphi %s1186_s22, %s1533_s22   ;;  %s1124_s21 = sphi %s1184_s21, %s1532_s21  }
   0xe   : > { %p50_p0 = scmp.ne.s32.totalorder %s1128_s22, %s1124_s21  ;;  %p1506_p1 = scmp.eq.s32.totalorder %s1205_s25, 0 }
   0xf   : > { %p169_p3 = scmp.eq.s32.totalorder %s697_s26, 1  ;;  %p698_p5 = scmp.ge.s32.totalorder %s1136_s24, 1 }
  0x10   : > { %p1214_p4 = por %p1506_p1, %p50_p0  ;;  %p202_p7 = scmp.lt.s32.totalorder %s1136_s24, 3 }
  0x11   : > { %p1219_p6 = por %p169_p3, %p50_p0  ;;  %s1138_s30 = smov [#allocation7]  }
  0x12   : > { %s1512_s27 = scalar_select %p1214_p4, 1, 0 }
  0x13   : > { %s1513_s28 = scalar_select %p1219_p6, 1, 0 }
  0x14   : > { %p1224_p8 = pnand %p698_p5, %p202_p7  ;;  %s214_s7 = sshll.u32 %s1138_s30, 4  ;;  %s1228_s7 = int_to_ptr.vmem [resolvable:$true] %s214_s7 }
  0x15   : > { %s1139_s9 = smov [#allocation8]   ;;  %s1516_s2 = sld [smem:[#allocation20_spill]] }
  0x16   : > { %s1514_s29 = scalar_select %p1224_p8, 1, 0 }
  0x17   : > { %p844_p9 = pneg %p1224_p8  ;;  %s230_s10 = sshll.u32 %s1139_s9, 4  ;;  %s1239_s10 = int_to_ptr.vmem [resolvable:$true] %s230_s10 }
  0x19   : > { %p1235_p11 = pnand %p844_p9, %p1506_p1 }
  0x1b   : > { %s910_s13 = scalar_lea.hbm %s1516_s2, 768  ;;  %p912_p13 = pneg %p1235_p11 }
  0x1c   : > { %p911_p12 = scmp.ne.s32.totalorder %s1516_s2, %s910_s13  ;;  %p917_p5 = scmp.lt.u32.totalorder %s910_s13, %s1516_s2 }
  0x1e   : > { %p913_p0 = pnand %p912_p13, %p911_p12 }
  0x20   : > { %p914_p3 = pneg %p913_p0 }
  0x22   : > { %p919_p7 = pnand %p917_p5, %p914_p3 }
  0x24   : > { %922 = shalt.err (!%p919_p7)
}
  0x25   : > { %s923_s18 = scalar_lea.vmem %s1228_s7, 768  ;;  %p931_p2 = scmp.lt.s32.totalorder %s1228_s7, %s1228_s7 }
  0x26   : > { %p924_p9 = scmp.ne.s32.totalorder %s1228_s7, %s923_s18  ;;  %p932_p12 = scmp.lt.s32.totalorder %s923_s18, %s923_s18 }
  0x28   : > { %p926_p10 = pnand %p924_p9, %p912_p13  ;;  %p933_p0 = por %p932_p12, %p931_p2 }
  0x2a   : > { %p927_p1 = pneg %p926_p10 }
  0x2c   : > { %p934_p6 = pnand %p933_p0, %p927_p1 }
  0x2e   : > { %937 = shalt.err (!%p934_p6)
}
  0x2f   : > { %s1140_s19 = smov 128   ;;  %s1141_s20 = smov 8  }
  0x30   : > { %847 = dma.hbm_to_vmem [thread:$0]  (!%p1235_p11), %s1516_s2, 768, %s1228_s7, [#allocation6], %s1140_s19, %s1140_s19, %s1141_s20  }
  0x31   : > { %s1517_s4 = sld [smem:[#allocation21_spill]] }
  0x37   : > { %s938_s12 = scalar_lea.hbm %s1517_s4, 2048 }
  0x38   : > { %p939_p2 = scmp.ne.s32.totalorder %s1517_s4, %s938_s12  ;;  %p945_p10 = scmp.lt.u32.totalorder %s938_s12, %s1517_s4 }
  0x3a   : > { %p941_p1 = pnand %p939_p2, %p912_p13 }
  0x3c   : > { %p942_p6 = pneg %p941_p1 }
  0x3e   : > { %p947_p3 = pnand %p945_p10, %p942_p6 }
  0x40   : > { %950 = shalt.err (!%p947_p3)
}
  0x41   : > { %s951_s7 = scalar_lea.vmem %s1239_s10, 2048  ;;  %p959_p12 = scmp.lt.s32.totalorder %s1239_s10, %s1239_s10 }
  0x42   : > { %p952_p5 = scmp.ne.s32.totalorder %s1239_s10, %s951_s7  ;;  %p960_p0 = scmp.lt.s32.totalorder %s951_s7, %s951_s7 }
  0x44   : > { %p954_p7 = pnand %p952_p5, %p912_p13  ;;  %p961_p2 = por %p960_p0, %p959_p12 }
  0x46   : > { %p955_p9 = pneg %p954_p7 }
  0x48   : > { %p962_p1 = pnand %p961_p2, %p955_p9 }
  0x4a   : > { %965 = shalt.err (!%p962_p1)
}
  0x4b   : > { %850 = dma.hbm_to_vmem [thread:$0]  (!%p1235_p11), %s1517_s4, 2048, %s1239_s10, [#allocation9], %s1140_s19, %s1140_s19, %s1141_s20  }
  0x4c   : > { %s1294_s26 = sadd.s32 1, %s1136_s24   ;;  %s37_s8 = sadd.s32 1, %s1132_s23 }
  0x4d   : > { %s34_s30 = ssub.s32 %s1136_s24, %s1294_s26  ;;  %p44_p13 = scmp.ne.s32.totalorder %s1132_s23, %s1128_s22 }
  0x4e   : > { %p35_p6 = scmp.eq.s32.totalorder %s34_s30, 0  ;;  %p45_p10 = scmp.eq.s32.totalorder %s1136_s24, 0 }
  0x4f   : > { %p1518_p3 = scmp.eq.s32.totalorder %s1205_s25, 1  ;;  %p867_p7 = scmp.lt.s32.totalorder %s1136_s24, 2 }
  0x50   : > { %s1310_s11 = scalar_select %p35_p6, %s1132_s23, %s37_s8  }
  0x51   : > { %p1304_p5 = por %p1518_p3, %p44_p13  ;;  %p46_p9 = por %p45_p10, %p44_p13 }
  0x52   : > { %1520 = sst [smem:[#allocation19_spill]] %s1310_s11  ;;  %s244_s12 = sand.u32 1, %s1132_s23  }
  0x53   : > { %s1519_s9 = scalar_select %p1304_p5, 1, 0 }
  0x54   : > { %s1313_s10 = sshll.u32 %s244_s12, 3  ;;  %s703_s19 = sshll.u32 %s1136_s24, 7 }
  0x55   : > { %s1319_s14 = scalar_lea.hbm %s1499_s0, %s703_s19  ;;  %s248_s15 = scalar_lea.vmem [#allocation2], %s1313_s10 }
  0x56   : > { %s255_s16 = sshll.u32 %s248_s15, 4  ;;  %p1324_p11 = pnand %p867_p7, %p46_p9  ;;  %s1322_s16 = int_to_ptr.vmem [resolvable:$true] %s255_s16 }
  0x57   : > { %s1331_s8 = scalar_lea.hbm %s1500_s1, %s703_s19  ;;  %s262_s30 = sand.u32 1, %s1136_s24  }
  0x58   : > { %s245_s20 = scalar_lea.sflag [#allocation3], %s244_s12  ;;  %s966_s13 = scalar_lea.hbm %s1319_s14, 128 }
  0x59   : > { %p967_p12 = scmp.ne.s32.totalorder %s1319_s14, %s966_s13  ;;  %p968_p0 = pneg %p1324_p11 }
  0x5a   : > { %s971_s4 = scalar_lea.hbm %s1499_s0, 256  ;;  %p972_p13 = scmp.lt.u32.totalorder %s1319_s14, %s1499_s0 }
  0x5b   : > { %p969_p2 = pnand %p968_p0, %p967_p12  ;;  %p973_p6 = scmp.lt.u32.totalorder %s971_s4, %s966_s13 }
  0x5c   : > { %p975_p3 = scmp.lt.u32.totalorder %s966_s13, %s1319_s14 }
  0x5d   : > { %p970_p1 = pneg %p969_p2  ;;  %p974_p10 = por %p973_p6, %p972_p13 }
  0x5f   : > { %p976_p7 = por %p975_p3, %p974_p10 }
  0x61   : > { %p977_p9 = pnand %p976_p7, %p970_p1 }
  0x63   : > { %980 = shalt.err (!%p977_p9)
}
  0x64   : > { %s981_s12 = scalar_lea.vmem %s1322_s16, 128  ;;  %s1142_s2 = smov [#allocation2]  }
  0x65   : > { %p982_p12 = scmp.ne.s32.totalorder %s1322_s16, %s981_s12  ;;  %s986_s19 = sshll.u32 %s1142_s2, 4  ;;  %s987_s19 = int_to_ptr.vmem [resolvable:$false] %s986_s19 }
  0x66   : > { %s988_s11 = scalar_lea.vmem %s987_s19, 256  ;;  %p989_p4 = scmp.lt.s32.totalorder %s1322_s16, %s987_s19 }
  0x67   : > { %p984_p2 = pnand %p982_p12, %p968_p0  ;;  %p990_p13 = scmp.lt.s32.totalorder %s988_s11, %s981_s12 }
  0x69   : > { %p985_p5 = pneg %p984_p2  ;;  %p991_p6 = por %p990_p13, %p989_p4 }
  0x6b   : > { %p992_p10 = pnand %p991_p6, %p985_p5 }
  0x6d   : > { %995 = shalt.err (!%p992_p10)
}
  0x6e   : > { %854 = dma.hbm_to_vmem [thread:$0]  (!%p1324_p11), %s1319_s14, 128, %s1322_s16, %s245_s20  }
  0x6f   : > { %s266_s4 = scalar_lea.vmem [#allocation5], %s1313_s10  ;;  %s263_s13 = scalar_lea.sflag [#allocation6], %s262_s30 }
  0x70   : > { %s273_s18 = sshll.u32 %s266_s4, 4  ;;  %s996_s15 = scalar_lea.hbm %s1331_s8, 128  ;;  %s274_s18 = int_to_ptr.vmem [resolvable:$true] %s273_s18 }
  0x71   : > { %p997_p4 = scmp.ne.s32.totalorder %s1331_s8, %s996_s15  ;;  %s1001_s2 = scalar_lea.hbm %s1500_s1, 256 }
  0x72   : > { %p1002_p3 = scmp.lt.u32.totalorder %s1331_s8, %s1500_s1  ;;  %p1003_p7 = scmp.lt.u32.totalorder %s1001_s2, %s996_s15 }
  0x73   : > { %p999_p5 = pnand %p997_p4, %p968_p0  ;;  %p1005_p12 = scmp.lt.u32.totalorder %s996_s15, %s1331_s8 }
  0x74   : > { %p1004_p9 = por %p1003_p7, %p1002_p3 }
  0x75   : > { %p1000_p1 = pneg %p999_p5 }
  0x76   : > { %p1006_p2 = por %p1005_p12, %p1004_p9 }
  0x78   : > { %p1007_p13 = pnand %p1006_p2, %p1000_p1 }
  0x7a   : > { %1010 = shalt.err (!%p1007_p13)
}
  0x7b   : > { %s1011_s10 = scalar_lea.vmem %s274_s18, 128  ;;  %s1143_s14 = smov [#allocation5]  }
  0x7c   : > { %p1012_p6 = scmp.ne.s32.totalorder %s274_s18, %s1011_s10  ;;  %s1016_s16 = sshll.u32 %s1143_s14, 4  ;;  %s1017_s16 = int_to_ptr.vmem [resolvable:$false] %s1016_s16 }
  0x7d   : > { %s1018_s30 = scalar_lea.vmem %s1017_s16, 256  ;;  %p1019_p5 = scmp.lt.s32.totalorder %s274_s18, %s1017_s16 }
  0x7e   : > { %p1014_p10 = pnand %p1012_p6, %p968_p0  ;;  %p1020_p8 = scmp.lt.s32.totalorder %s1018_s30, %s1011_s10 }
  0x80   : > { %p1015_p4 = pneg %p1014_p10  ;;  %p1021_p3 = por %p1020_p8, %p1019_p5 }
  0x82   : > { %p1022_p7 = pnand %p1021_p3, %p1015_p4 }
  0x84   : > { %1025 = shalt.err (!%p1022_p7)
}
  0x85   : > { %857 = dma.hbm_to_vmem [thread:$0]  (!%p1324_p11), %s1331_s8, 128, %s274_s18, %s263_s13  }
  0x86   : > { %p1522_p1 = scmp.ne.s32.totalorder %s1514_s29, 0 }
  0x87   : > { %s1384_s20 = sand.u32 (!%p1522_p1), 1, %s1128_s22   ;;  %p1523_p8 = scmp.ne.s32.totalorder (!%p1522_p1), %s1512_s27, 0 }
  0x88   : > { %282 = sbr.rel (%p1522_p1) target bundleno = 422 (0x1a6), region = 40  ;;  %s1387_s4 = sshll.u32 (!%p1522_p1), %s1384_s20, 3 }
  0x89   : > { %s285_s15 = scalar_lea.sflag (!%p1522_p1), [#allocation3], %s1384_s20  ;;  %s288_s17 = scalar_lea.vmem (!%p1522_p1), [#allocation2], %s1387_s4 }
  0x8f   : > { %1099 = dma.done.wait (%p1523_p8), %s285_s15, 128  }
  0x90   : > { %1101 = vsyncadd (%p1523_p8), %s285_s15, 4294967168  ;;  %s293_s29 = sand.u32 1, %s1205_s25   ;;  %s297_s8 = scalar_lea.vmem [#allocation5], %s1387_s4 }
  0x91   : > { %s294_s7 = scalar_lea.sflag [#allocation6], %s293_s29 }
  0x92   : > { %1103 = dma.done.wait (%p1523_p8), %s294_s7, 128  }
  0x93   : > { %1105 = vsyncadd (%p1523_p8), %s294_s7, 4294967168  ;;  %p1524_p11 = scmp.eq.s32.totalorder %s1205_s25, 0 }
  0x95   : > { %1107 = dma.done.wait (%p1524_p11), [#allocation6], 768   ;;  %p1525_p0 = pmov %p1524_p11 }
  0x97   : > { %1109 = vsyncadd (%p1525_p0), [#allocation6], 4294966528  ;;  %p1526_p9 = pmov %p1525_p0 }
  0x98   : > { %p1527_p12 = pmov %p1525_p0 }
  0x99   : > { %1111 = dma.done.wait (%p1526_p9), [#allocation9], 2048  }
  0x9a   : > { %1113 = vsyncadd (%p1527_p12), [#allocation9], 4294965248  ;;  %v1144_v0 = vmov 0.0|0.0   ;;  %vm1145_vm0 = vmmov 0   ;;  %v1146_v1 = vmov 0.0   ;;  %v434_v2 = vld [vmem:[#allocation8] sm:$0xff] }
  0x9b   : > { %804 = vmatprep.subr.bf16.mxu1 %v1144_v0  ;;  %795 = vmatprep.subr.bf16.mxu0 %v1144_v0  ;;  %v435_v3 = vld [vmem:[#allocation8 + $0x8] sm:$0xff]  ;;  %v436_v4 = vld [vmem:[#allocation8 + $0x10] sm:$0xff]  ;;  %v437_v6 = vld [vmem:[#allocation8 + $0x18] sm:$0xff]  ;;  %vm358_vm1 = vcmask 392192   ;;  %s717_s13 = sshll.u32 %s1205_s25, 7  ;;  %s336_s12 = scalar_lea.vmem [#allocation10], %s1387_s4 }
  0x9c   : > { %757 = vmatprep.mubr.msk.f32.mxu0 %vm1145_vm0, %v1146_v1  ;;  %792 = vmatprep.mubr.msk.f32.mxu1 %vm1145_vm0, %v1146_v1  ;;  %v805_v5 = vpack.c.bf16 %v435_v3, %v434_v2  ;;  %v808_v7 = vpack.c.bf16 %v437_v6, %v436_v4  ;;  %v345_v8 = vld [vmem:[#allocation7] sm:$0xff]  ;;  %v346_v9 = vld [vmem:[#allocation7 + $0x8] sm:$0xff]  ;;  %v438_v10 = vld [vmem:[#allocation8 + $0x20] sm:$0xff]  ;;  %s540_s2 = sshll.u32 %s336_s12, 4  ;;  %s1423_s10 = scalar_lea.hbm %s1504_s5, %s717_s13  ;;  %s1425_s2 = int_to_ptr.vmem [resolvable:$true] %s540_s2 }
  0x9d   : > { %v439_v11 = vld [vmem:[#allocation8 + $0x28] sm:$0xff]  ;;  %v796_v12 = vpack.c.bf16 %v346_v9, %v345_v8  ;;  %v347_v13 = vld [vmem:[#allocation7 + $0x10] sm:$0xff]  ;;  %v349_v17 = vld [vmem:[#allocation7 + $0x20] sm:$0xff]  ;;  %s522_s14 = scalar_lea.sflag [#allocation4], %s1384_s20  ;;  %s1026_s16 = scalar_lea.vmem %s1425_s2, 128 }
  0x9e   : > { %806 = vmatpush3.bf16.msra.mxu1 %v805_v5  ;;  %v348_v14 = vld [vmem:[#allocation7 + $0x18] sm:$0xff]  ;;  %v811_v16 = vpack.c.bf16 %v439_v11, %v438_v10  ;;  %v350_v18 = vld [vmem:[#allocation7 + $0x28] sm:$0xff]  ;;  %v440_v19 = vld [vmem:[#allocation8 + $0x30] sm:$0xff]  ;;  %p1027_p2 = scmp.ne.s32.totalorder %s1425_s2, %s1026_s16  ;;  %p1528_p13 = scmp.ne.s32.totalorder %s1519_s9, 0 }
  0x9f   : > { %807 = vmatprep.subr.bf16.mxu1 %v1144_v0  ;;  %797 = vmatpush3.bf16.msra.mxu0 %v796_v12  ;;  %v799_v15 = vpack.c.bf16 %v348_v14, %v347_v13  ;;  %v441_v20 = vld [vmem:[#allocation8 + $0x38] sm:$0xff]  ;;  %v802_v21 = vpack.c.bf16 %v350_v18, %v349_v17  ;;  %v442_v23 = vld [vmem:[#allocation8 + $0x40] sm:$0xff]  ;;  %v443_v24 = vld [vmem:[#allocation8 + $0x48] sm:$0xff]  ;;  %s1147_s30 = smov [#allocation10]  }
  0xa0   : > { %798 = vmatprep.subr.bf16.mxu0 %v1144_v0  ;;  %v814_v22 = vpack.c.bf16 %v441_v20, %v440_v19  ;;  %v344_v25 = vld [vmem:[%s288_s17] sm:$0xff]  ;;  %v817_v26 = vpack.c.bf16 %v443_v24, %v442_v23  ;;  %v446_v30 = vld [vmem:[#allocation8 + $0x60] sm:$0xff]  ;;  %v447_v31 = vld [vmem:[#allocation8 + $0x68] sm:$0xff]  ;;  %p1028_p6 = pnand %p1027_p2, %p1528_p13  ;;  %s1030_s15 = sshll.u32 %s1147_s30, 4  ;;  %s1031_s15 = int_to_ptr.vmem [resolvable:$false] %s1030_s15 }
  0xa1   : > { %v444_v27 = vld [vmem:[#allocation8 + $0x50] sm:$0xff]  ;;  %v445_v28 = vld [vmem:[#allocation8 + $0x58] sm:$0xff]  ;;  %v823_v32 = vpack.c.bf16 %v447_v31, %v446_v30  ;;  %v433_v36 = vld [vmem:[%s297_s8] sm:$0xff]  ;;  %s1032_s17 = scalar_lea.vmem %s1031_s15, 256  ;;  %p1033_p4 = scmp.lt.s32.totalorder %s1425_s2, %s1031_s15 }
  0xa2   : > { %809 = vmatpush3.bf16.msra.mxu1 %v808_v7  ;;  %v820_v29 = vpack.c.bf16 %v445_v28, %v444_v27  ;;  %v448_v33 = vld [vmem:[#allocation8 + $0x70] sm:$0xff]  ;;  %v449_v34 = vld [vmem:[#allocation8 + $0x78] sm:$0xff]  ;;  %p1029_p10 = pneg %p1028_p6  ;;  %p1034_p5 = scmp.lt.s32.totalorder %s1032_s17, %s1026_s16 }
  0xa3   : > { %810 = vmatprep.subr.bf16.mxu1 %v1144_v0  ;;  %800 = vmatpush3.bf16.msra.mxu0 %v799_v15  ;;  %v826_v35 = vpack.c.bf16 %v449_v34, %v448_v33  ;;  %v713_v37 = vld [vmem:[%s1502_s3] ss:$0 sm:$0xff] }
  0xa4   : > { %801 = vmatprep.subr.bf16.mxu0 %v1144_v0  ;;  %p1035_p3 = por %p1034_p5, %p1033_p4 }
  0xa6   : > { %812 = vmatpush3.bf16.msra.mxu1 %v811_v16  ;;  %p1036_p7 = pnand %p1035_p3, %p1029_p10 }
  0xa7   : > { %813 = vmatprep.subr.bf16.mxu1 %v1144_v0  ;;  %803 = vmatpush3.bf16.msra.mxu0 %v802_v21 }
  0xaa   : > { %815 = vmatpush3.bf16.msra.mxu1 %v814_v22  ;;  %758 = vmatmul.mubr.msk.f32.vlgmr.msra.gmra.mrb[0].mxu0 %vm358_vm1, %v344_v25 }
  0xab   : > { %816 = vmatprep.subr.bf16.mxu1 %v1144_v0 }
  0xae   : > { %818 = vmatpush3.bf16.msra.mxu1 %v817_v26 }
  0xaf   : > { %819 = vmatprep.subr.bf16.mxu1 %v1144_v0 }
  0xb2   : > { %821 = vmatpush3.bf16.msra.mxu1 %v820_v29 }
  0xb3   : > { %822 = vmatprep.subr.bf16.mxu1 %v1144_v0 }
  0xb6   : > { %824 = vmatpush3.bf16.msra.mxu1 %v823_v32 }
  0xb7   : > { %825 = vmatprep.subr.bf16.mxu1 %v1144_v0 }
  0xba   : > { %827 = vmatpush3.bf16.msra.mxu1 %v826_v35 }
  0xbd   : > { %793 = vmatmul.mubr.f32.vlgmr.msra.gmra.mrb[0].mxu1 %v433_v36 }
 0x17d   : > { %v428_v38 = vpop.f32.mrb[0].mxu0 }
 0x17e   : > { %v429_v39 = vadd.f32 %v713_v37, %v428_v38  ;;  %v759_v40 = vpop.f32.mrb[1].mxu0 }
 0x180   : > { %432 = vst [vmem:[%s336_s12] sm:$0xff] %v429_v39 }
 0x181   : > { %1039 = shalt.err (!%p1036_p7)
}
 0x182   : > { %s1040_s29 = scalar_lea.hbm %s1423_s10, 128  ;;  %s1044_s27 = scalar_lea.hbm %s1504_s5, 256 }
 0x183   : > { %p1041_p1 = scmp.ne.s32.totalorder %s1423_s10, %s1040_s29  ;;  %p1045_p0 = scmp.lt.u32.totalorder %s1423_s10, %s1504_s5 }
 0x184   : > { %p1046_p9 = scmp.lt.u32.totalorder %s1044_s27, %s1040_s29  ;;  %p1048_p2 = scmp.lt.u32.totalorder %s1040_s29, %s1423_s10 }
 0x185   : > { %p1042_p8 = pnand %p1041_p1, %p1528_p13 }
 0x186   : > { %p1047_p12 = por %p1046_p9, %p1045_p0 }
 0x187   : > { %p1043_p11 = pneg %p1042_p8 }
 0x188   : > { %p1049_p6 = por %p1048_p2, %p1047_p12 }
 0x18a   : > { %p1050_p10 = pnand %p1049_p6, %p1043_p11 }
 0x18c   : > { %1053 = shalt.err (!%p1050_p10)
}
 0x18d   : > { %840 = dma.vmem_to_hbm [thread:$0]  (%p1528_p13), %s1425_s2, 128, %s1423_s10, %s522_s14  }
 0x18e   : > { %s343_s19 = scalar_lea.vmem [#allocation11], %s1387_s4  ;;  %s1457_s15 = scalar_lea.hbm %s1505_s6, %s717_s13 }
 0x18f   : > { %s553_s11 = sshll.u32 %s343_s19, 4  ;;  %s527_s17 = scalar_lea.sflag [#allocation12], %s1384_s20  ;;  %s1450_s11 = int_to_ptr.vmem [resolvable:$true] %s553_s11 }
 0x190   : > { %v516_v41 = vpop.f32.mrb[0].mxu1  ;;  %s1054_s29 = scalar_lea.vmem %s1450_s11, 128  ;;  %s1148_s4 = smov [#allocation11]  }
 0x191   : > { %520 = vst [vmem:[%s343_s19] sm:$0xff] %v516_v41  ;;  %v794_v42 = vpop.f32.mrb[1].mxu1  ;;  %p1055_p4 = scmp.ne.s32.totalorder %s1450_s11, %s1054_s29  ;;  %s1058_s2 = sshll.u32 %s1148_s4, 4  ;;  %s1059_s2 = int_to_ptr.vmem [resolvable:$false] %s1058_s2 }
 0x192   : > { %s1060_s25 = scalar_lea.vmem %s1059_s2, 256  ;;  %p1061_p7 = scmp.lt.s32.totalorder %s1450_s11, %s1059_s2 }
 0x193   : > { %p1056_p5 = pnand %p1055_p4, %p1528_p13  ;;  %p1062_p1 = scmp.lt.s32.totalorder %s1060_s25, %s1054_s29 }
 0x195   : > { %p1057_p3 = pneg %p1056_p5  ;;  %p1063_p8 = por %p1062_p1, %p1061_p7 }
 0x197   : > { %p1064_p11 = pnand %p1063_p8, %p1057_p3 }
 0x199   : > { %1067 = shalt.err (!%p1064_p11)
}
 0x19a   : > { %s1068_s20 = scalar_lea.hbm %s1457_s15, 128  ;;  %s1072_s14 = scalar_lea.hbm %s1505_s6, 256 }
 0x19b   : > { %p1069_p0 = scmp.ne.s32.totalorder %s1457_s15, %s1068_s20  ;;  %p1073_p2 = scmp.lt.u32.totalorder %s1457_s15, %s1505_s6 }
 0x19c   : > { %p1074_p6 = scmp.lt.u32.totalorder %s1072_s14, %s1068_s20  ;;  %p1076_p4 = scmp.lt.u32.totalorder %s1068_s20, %s1457_s15 }
 0x19d   : > { %p1070_p9 = pnand %p1069_p0, %p1528_p13 }
 0x19e   : > { %p1075_p10 = por %p1074_p6, %p1073_p2 }
 0x19f   : > { %p1071_p12 = pneg %p1070_p9 }
 0x1a0   : > { %p1077_p5 = por %p1076_p4, %p1075_p10 }
 0x1a2   : > { %p1078_p3 = pnand %p1077_p5, %p1071_p12 }
 0x1a4   : > { %1081 = shalt.err (!%p1078_p3)
}
 0x1a5   : > { %841 = dma.vmem_to_hbm [thread:$0]  (%p1528_p13), %s1450_s11, 128, %s1457_s15, %s527_s17  }
 0x1a6 PF: > { %s565_s27 = sand.u32 1, %s1124_s21   ;;  %p1529_p7 = scmp.ne.s32.totalorder %s1513_s28, 0 }
 0x1a7   : > { %p1530_p1 = scmp.ge.s32.totalorder %s1136_s24, 2  ;;  %s566_s18 = scalar_lea.sflag [#allocation4], %s565_s27 }
 0x1a9   : > { %p859_p8 = pnand %p1530_p1, %p1529_p7 }
 0x1ab   : > { %1115 = dma.done.wait (!%p859_p8), %s566_s18, 128  }
 0x1ac   : > { %1117 = vsyncadd (!%p859_p8), %s566_s18, 4294967168  ;;  %s575_s12 = scalar_lea.sflag [#allocation12], %s565_s27 }
 0x1ad   : > { %1119 = dma.done.wait (!%p859_p8), %s575_s12, 128  }
 0x1ae   : > { %1121 = vsyncadd (!%p859_p8), %s575_s12, 4294967168  ;;  %s1531_s9 = sld [smem:[#allocation19_spill]]  ;;  %p27_p13 = scmp.ge.s32.totalorder %s1294_s26, 4  }
 0x1af   : > { %s1532_s21 = smov %s1128_s22  ;;  %s1533_s22 = smov %s1132_s23 }
 0x1b0   : > { %s1535_s24 = smov %s1294_s26  ;;  %29 = sbr.rel (!%p27_p13) target bundleno = 13 (0xd), region = 123 }
 0x1b4   : > { %s1534_s23 = smov %s1531_s9 }
 0x1b7   :  { %580 = vsyncpa [#allocation3], 1 }
 0x1b8   :  { %582 = vsyncpa [#allocation3 + $0x1], 1 }
 0x1b9   :  { %583 = vsyncpa [#allocation6], 1 }
 0x1ba   :  { %585 = vsyncpa [#allocation6 + $0x1], 1 }
 0x1bb   :  { %586 = vsyncpa [#allocation9], 1 }
 0x1bc   :  { %587 = vsyncpa [#allocation4], 1 }
 0x1bd   :  { %589 = vsyncpa [#allocation4 + $0x1], 1 }
 0x1be   :  { %590 = vsyncpa [#allocation12], 1 }
 0x1bf   :  { %592 = vsyncpa [#allocation12 + $0x1], 1 }

</bundles_post_ra>
